<compile_context>
chip_gen: v5e
topology: v5e:2x2
jax: 0.10.0
libtpu: 0.0.40
codegen_flags: <defaults>
</compile_context>

<pallas_src>
import math

import jax
import jax.numpy as jnp
from jax.experimental import pallas as pl
from jax.experimental.pallas import tpu as pltpu

_LANE = 128      # vreg lane width
_SUBLANE = 8     # vreg sublane count (f32)
# Per-input-buffer VMEM budget. Default double buffering costs at most 2x
# this plus a tiny output buffer -> safe on v5e (16 MiB scoped default),
# v6e (32 MiB) and v7x (64 MiB physical) without raising vmem_limit_bytes.
_VMEM_BLOCK_BUDGET = 4 * 1024 * 1024


def _round_up(n, m):
    return ((n + m - 1) // m) * m


def _rowsum_kernel(x_ref, o_ref):
    """Sum each row of the (TR, L_pad) input block into a (TR, 1) column.

    Two-stage reduction: elementwise (VPU) accumulation of 128-wide lane
    chunks, then a single cross-lane (XLU) reduce, so the XLU slot is touched
    once per block.
    """
    xb = x_ref[...].astype(jnp.float32)              # f32 accumulation
    n_chunks = xb.shape[-1] // _LANE
    if n_chunks <= 64:
        acc = xb[:, 0:_LANE]
        for c in range(1, n_chunks):                 # static unroll: VPU adds
            acc = acc + xb[:, c * _LANE:(c + 1) * _LANE]
        row = jnp.sum(acc, axis=-1, keepdims=True)   # one XLU cross-lane reduce
    else:
        # Very wide blocks: let Mosaic pick the reduction tree.
        row = jnp.sum(xb, axis=-1, keepdims=True)
    o_ref[...] = row.astype(o_ref.dtype)


def embedding_net_forward(x, shape):
    """Pallas implementation of EmbeddingNet(shape)(x).

    Sums away the trailing (len(shape) - 1) axes of x.
    """
    n_reduce = len(shape) - 1
    if n_reduce <= 0:
        return x  # identity, nothing to reduce

    out_shape = x.shape[: x.ndim - n_reduce]
    out_dtype = x.dtype

    # --- wrapper-side layout plumbing (free): flatten to (rows, reduce) ---
    R = int(math.prod(out_shape)) if out_shape else 1
    L = int(math.prod(x.shape[x.ndim - n_reduce:]))
    x2 = x.reshape(R, L)

    # Zero-pad the reduced axis up to a lane multiple (sum-safe).
    L_pad = max(_LANE, _round_up(L, _LANE))
    if L_pad != L:
        x2 = jnp.pad(x2, ((0, 0), (0, L_pad - L)))

    # Largest row tile whose input block fits the per-buffer budget.
    itemsize = x2.dtype.itemsize
    max_tr = max(
        _SUBLANE,
        (_VMEM_BLOCK_BUDGET // (L_pad * itemsize)) // _SUBLANE * _SUBLANE,
    )
    # TODO(synk): if L_pad alone ever exceeds the VMEM budget, also tile the
    # reduced axis as a trailing "arbitrary" grid dim with a pl.when-guarded
    # f32 accumulator (P3 pattern); not needed at these sizes.
    tr = min(max_tr, _round_up(R, _SUBLANE))

    R_pad = _round_up(R, tr)
    if R_pad != R:
        x2 = jnp.pad(x2, ((0, R_pad - R), (0, 0)))
    num_blocks = R_pad // tr

    flops = R_pad * L_pad                                   # adds
    bytes_accessed = R_pad * L_pad * itemsize + R_pad * itemsize

    out = pl.pallas_call(
        _rowsum_kernel,
        out_shape=jax.ShapeDtypeStruct((R_pad, 1), out_dtype),
        grid=(num_blocks,),
        in_specs=[pl.BlockSpec((tr, L_pad), lambda i: (i, 0))],
        out_specs=pl.BlockSpec((tr, 1), lambda i: (i, 0)),
        compiler_params=pltpu.CompilerParams(
            dimension_semantics=("parallel",)),
        cost_estimate=pl.CostEstimate(
            flops=flops, transcendentals=0, bytes_accessed=bytes_accessed),
    )(x2)

    # Drop row padding and restore the leading (B, C, ...) shape.
    return out.reshape(R_pad)[:R].reshape(out_shape)


if __name__ == "__main__":
    # Small shapes consistent with the module: sample shape (C, H, W) = (4, 16, 16),
    # batch B = 2  ->  input x: (2, 4, 16, 16), output: (2, 4).
    key = jax.random.PRNGKey(0)
    B, C, H, W = 2, 4, 16, 16
    sample_shape = (C, H, W)

    x = jax.random.normal(key, (B, C, H, W), dtype=jnp.float32)

    out = embedding_net_forward(x, sample_shape)
    out = jax.block_until_ready(out)

    # Reference: same semantics as the torch loop.
    ref = x
    for _ in range(len(sample_shape) - 1):
        ref = jnp.sum(ref, axis=-1)

    assert out.shape == (B, C), out.shape
    assert jnp.allclose(out, ref, atol=1e-5, rtol=1e-5)

    print("KERNEL_OK")
</pallas_src>

<mosaic_0001>
module attributes {stable_mosaic.version = 11 : i64} {
  func.func @_rowsum_kernel(%arg0: i32, %arg1: memref<8x256xf32, #tpu.memory_space<vmem>>, %arg2: memref<8x1xf32, #tpu.memory_space<vmem>>) attributes {dimension_semantics = [#tpu.dimension_semantics<parallel>], iteration_bounds = array<i64: 1>, scalar_prefetch = 0 : i64, scratch_operands = 0 : i64, tpu.core_type = #tpu.core_type<tc>, window_params = [{transform_indices = @transform_0, window_bounds = array<i64: 8, 256>}, {transform_indices = @transform_1, window_bounds = array<i64: 8, 1>}]} {
    %c0 = arith.constant 0 : index
    %c0_0 = arith.constant 0 : index
    %0 = vector.load %arg1[%c0, %c0_0] : memref<8x256xf32, #tpu.memory_space<vmem>>, vector<8x256xf32>
    %1 = vector.extract_strided_slice %0 {offsets = [0, 0], sizes = [8, 128], strides = [1, 1]} : vector<8x256xf32> to vector<8x128xf32>
    %2 = vector.extract_strided_slice %0 {offsets = [0, 128], sizes = [8, 128], strides = [1, 1]} : vector<8x256xf32> to vector<8x128xf32>
    %3 = arith.addf %1, %2 : vector<8x128xf32>
    %cst = arith.constant dense<0.000000e+00> : vector<8xf32>
    %4 = vector.multi_reduction <add>, %3, %cst [1] : vector<8x128xf32> to vector<8xf32>
    %5 = vector.shape_cast %4 : vector<8xf32> to vector<8x1xf32>
    %c0_1 = arith.constant 0 : index
    %c0_2 = arith.constant 0 : index
    %6 = vector.load %arg2[%c0_1, %c0_2] : memref<8x1xf32, #tpu.memory_space<vmem>>, vector<8x1xf32>
    tpu.vector_store %arg2[%c0_1, %c0_2], %5 {strides = array<i32>} : memref<8x1xf32, #tpu.memory_space<vmem>>, vector<8x1xf32>,
    return
  }
  func.func @transform_0(%arg0: i32) -> (i32, i32) {
    %c0_i32 = arith.constant 0 : i32
    %c0_i32_0 = arith.constant 0 : i32
    return %arg0, %c0_i32 : i32, i32
  }
  func.func @transform_1(%arg0: i32) -> (i32, i32) {
    %c0_i32 = arith.constant 0 : i32
    %c0_i32_0 = arith.constant 0 : i32
    return %arg0, %c0_i32 : i32, i32
  }
}

</mosaic_0001>

<bundles_post_ra>
// kernel: tpu_custom_call.1
= control target key start
LH: loop header
LB: loop body
LE: loop exit
PB: predicated region body
PF: predicated region fallthrough
CT: control target
= control target key end

     0   :  { %6 = vsyncpa [#allocation3], 0  ;;  %s61_s9 = smov [#allocation2]   ;;  %s78_s0 = inlined_call_operand.hbm [shape: f32[8,256], index: 0, kind: input, shape index: {}]   ;;  %s79_s1 = inlined_call_operand.vmem [shape: f32[8,1], index: 1, kind: output, shape index: {}]  }
   0x1   :  { %s12_s8 = sshll.u32 %s78_s0, 4  ;;  %s14_s10 = sshll.u32 %s61_s9, 4  ;;  %s13_s8 = int_to_ptr.hbm [resolvable:$true] %s12_s8  ;;  %s15_s10 = int_to_ptr.vmem [resolvable:$true] %s14_s10 }
   0x2   :  { %17 = dma.hbm_to_vmem [thread:$0]  %s13_s8, 256, %s15_s10, [#allocation3]  }
   0x3   :  { %59 = dma.done.wait [#allocation3], 256  }
   0x4   :  { %60 = vsyncadd [#allocation3], 4294967040  ;;  %v22_v0 = vld [vmem:[#allocation2] sm:$0xff]  ;;  %v23_v1 = vld [vmem:[#allocation2 + $0x8] sm:$0xff]  ;;  %vm27_vm0 = vcmask 7168  }
   0x5   :  { %v24_v2 = vadd.f32 %v23_v1, %v22_v0 }
   0x7   :  { %25 = vadd.xlane.f32.xlu0 %v24_v2 }
  0x7a   :  { %v26_v3 = vpop.xlane.xlu0 %25 }
  0x7b   :  { %28 = vst.msk [vmem:[%s79_s1] sm:$0xff] %vm27_vm0, %v26_v3 }
  0x7c   :  { %33 = vsyncpa [#allocation3], 1 }

</bundles_post_ra>
